<compile_context>
chip_gen: v5e
topology: v5e:2x2
jax: 0.10.0
libtpu: 0.0.40
codegen_flags: <defaults>
</compile_context>

<pallas_src>
import functools

import jax
import jax.numpy as jnp
from jax.experimental import pallas as pl
from jax.experimental.pallas import tpu as pltpu

DILATE_REACH = 3  # 3 iterations of a 3x3 structuring element == one 7x7 max


# ----------------------------------------------------------------------------
# Fused kernel: per-tile 7x7 dilation of the uint8-cast targets + border-
# weighted cross entropy on NCHW logits.
#   logits_ref : (1, C, TH, W)            -- W on lanes, class axis leading
#   tpad_ref   : (1, HpadT, W + 2R) int32 -- zero-padded ORIGINAL targets,
#                whole image, same block for every h -> DMA'd once per image
#   out_ref    : (1, 8, W) f32            -- lane-dense partial sum
# ----------------------------------------------------------------------------
def _border_ce_kernel(logits_ref, tpad_ref, out_ref, *, ignore_index, valid_h):
    R = DILATE_REACH
    _, C, TH, W = logits_ref.shape
    h_id = pl.program_id(1)

    # ---- pass 1 over logits: class max (per-plane cast, pure VPU) ----------
    # TODO(synk): for very large C switch these unrolled Python loops to a
    # lax.fori_loop with a dynamic class index to bound code size.
    m = logits_ref[0, 0].astype(jnp.float32)
    for c in range(1, C):
        m = jnp.maximum(m, logits_ref[0, c].astype(jnp.float32))

    # ---- targets halo for this tile (rows h*TH-R .. h*TH+TH+R-1, padded) ---
    row_start = h_id * TH
    if TH % 8 == 0:
        row_start = pl.multiple_of(row_start, 8)
    halo = tpad_ref[0, pl.ds(row_start, TH + 8), :]          # (TH+8, W+2R) i32
    t = halo[R:R + TH, R:R + W]                               # original labels

    # uint8 cast (low 8 bits, matches np.uint8 for -1 -> 255), then separable
    # 7x7 max with a doubling schedule; zero padding == cv2 border handling.
    u8 = jnp.bitwise_and(halo, 255)
    a = jnp.maximum(u8[:, :-1], u8[:, 1:])                    # window 2
    a = jnp.maximum(a[:, :-2], a[:, 2:])                      # window 4
    a = jnp.maximum(a[:, :-3], a[:, 3:])                      # window 7 -> (TH+8, W)
    v = jnp.maximum(a[:-1, :], a[1:, :])
    v = jnp.maximum(v[:-2, :], v[2:, :])
    v = jnp.maximum(v[:-3, :], v[3:, :])                      # (TH+2, W)
    dil = v[:TH, :]                                           # dilated labels

    # ---- pass 2 over logits: exp-sum + target-logit select -----------------
    s = jnp.zeros((TH, W), jnp.float32)
    tgt_logit = jnp.zeros((TH, W), jnp.float32)
    for c in range(C):
        xc = logits_ref[0, c].astype(jnp.float32)
        s = s + jnp.exp(xc - m)
        tgt_logit = jnp.where(t == c, xc, tgt_logit)
    ce = m + jnp.log(s) - tgt_logit                           # (TH, W)

    # Border weight uses the ORIGINAL targets (ignore pixels are masked below,
    # matching CrossEntropyLoss(ignore_index, reduction='none') -> 0 there).
    border = (dil - t).astype(jnp.float32)

    # Mask ignored pixels and rows past the true image height (tail H tile);
    # mask BEFORE any row reduction so garbage tail rows cannot leak NaN/Inf.
    row = row_start + jax.lax.broadcasted_iota(jnp.int32, (TH, W), 0)
    valid = (t != ignore_index) & (row < valid_h)
    contrib = jnp.where(valid, border * ce, 0.0)

    # Lane-dense (8, W) partial; all 8 rows carry real data.
    if TH % 8 == 0:
        acc = contrib[0:8, :]
        for i in range(1, TH // 8):
            acc = acc + contrib[i * 8:(i + 1) * 8, :]
        out_ref[0] = acc
    else:  # only when H < 8 (full-dim block)
        psum = jnp.sum(contrib, axis=0, keepdims=True)        # (1, W)
        row0 = jax.lax.broadcasted_iota(jnp.int32, (8, W), 0) == 0
        out_ref[0] = jnp.where(row0, jnp.broadcast_to(psum, (8, W)), 0.0)


# ----------------------------------------------------------------------------
# Wrapper
# ----------------------------------------------------------------------------
def border_cross_entropy_loss(inputs, targets, *, ignore_index=-1,
                              tile_h=None):
    """inputs: (N, C, H, W) float logits; targets: (N, H, W) int labels."""
    N, C, H, W = inputs.shape
    R = DILATE_REACH
    itemsize = jnp.dtype(inputs.dtype).itemsize
    t_i32 = targets.astype(jnp.int32)

    # --- tile height: ~2 MiB of logits per block, sublane aligned -----------
    if tile_h is None:
        target_bytes = 2 * 1024 * 1024
        th = max(8, target_bytes // max(1, C * W * itemsize))
    else:
        th = max(1, tile_h)
    if H >= 8:
        th = max(8, (min(th, H) // 8) * 8)   # multiple of 8, <= H
    else:
        th = H                               # full-dim block is always legal
    gh = pl.cdiv(H, th)

    # --- one zero-padded copy of the ORIGINAL targets -----------------------
    # The kernel derives both the center tile and its 7x7 dilation from this
    # single array, so no dilated image ever touches HBM.  HpadT keeps the
    # in-kernel (th + 8)-row slices sublane-aligned and always in bounds.
    HpadT = gh * th + 8
    WpT = W + 2 * R
    tpad = jnp.pad(t_i32, ((0, 0), (R, HpadT - R - H), (R, R)),
                   constant_values=0)

    # --- explicit VMEM budget (double buffers + f32 temporaries) ------------
    lane = lambda x: ((x + 127) // 128) * 128
    sub8 = lambda x: ((x + 7) // 8) * 8
    logits_blk = C * sub8(th) * lane(W) * itemsize
    tgt_blk = sub8(HpadT) * lane(WpT) * 4
    out_blk = 8 * lane(W) * 4
    temps = 12 * sub8(th + 8) * lane(WpT) * 4
    budget = 2 * logits_blk + 2 * tgt_blk + 2 * out_blk + temps
    vmem_limit = int(budget * 1.5) + (4 << 20)
    vmem_limit = max(32 << 20, min(vmem_limit, 56 << 20))
    # TODO(synk): for images whose whole-image padded-targets block no longer
    # fits this budget, switch the targets input to memory_space=pl.ANY and a
    # manual per-tile halo DMA instead of the once-per-image block.

    kernel = functools.partial(_border_ce_kernel,
                               ignore_index=ignore_index, valid_h=H)
    partials = pl.pallas_call(
        kernel,
        out_shape=jax.ShapeDtypeStruct((N, gh * 8, W), jnp.float32),
        grid=(N, gh),
        in_specs=[
            pl.BlockSpec((1, C, th, W), lambda n, h: (n, 0, h, 0)),
            # same block index for every h -> fetched once per image
            pl.BlockSpec((1, HpadT, WpT), lambda n, h: (n, 0, 0)),
        ],
        out_specs=pl.BlockSpec((1, 8, W), lambda n, h: (n, h, 0)),
        compiler_params=pltpu.CompilerParams(
            dimension_semantics=("parallel", "parallel"),
            vmem_limit_bytes=vmem_limit),
    )(inputs, tpad)

    return jnp.sum(partials)


# ----------------------------------------------------------------------------
# Pure-JAX reference (mirrors the PyTorch module)
# ----------------------------------------------------------------------------
def _reference(inputs, targets, ignore_index=-1):
    t_u8 = jnp.bitwise_and(targets.astype(jnp.int32), 255)
    d = t_u8
    for _ in range(3):
        d = jax.lax.reduce_window(d, jnp.int32(0), jax.lax.max,
                                  (1, 3, 3), (1, 1, 1), "SAME")
    border = (d - targets).astype(jnp.float32)
    logp = jax.nn.log_softmax(inputs.astype(jnp.float32), axis=1)
    C = inputs.shape[1]
    t_clip = jnp.clip(targets, 0, C - 1)
    ce = -jnp.take_along_axis(logp, t_clip[:, None, :, :], axis=1)[:, 0]
    ce = jnp.where(targets == ignore_index, 0.0, ce)
    return jnp.sum(border * ce)


if __name__ == "__main__":
    # The module has no learnable parameters (only ignore_index).
    key = jax.random.PRNGKey(0)
    k1, k2, k3 = jax.random.split(key, 3)

    N, C, H, W = 2, 4, 16, 16
    inputs = jax.random.normal(k1, (N, C, H, W), dtype=jnp.float32)
    targets = jax.random.randint(k2, (N, H, W), 0, C, dtype=jnp.int32)
    ignore_mask = jax.random.bernoulli(k3, 0.1, (N, H, W))
    targets = jnp.where(ignore_mask, -1, targets)

    loss = border_cross_entropy_loss(inputs, targets, ignore_index=-1)
    loss = jax.block_until_ready(loss)

    ref = jax.block_until_ready(_reference(inputs, targets, ignore_index=-1))
    assert jnp.allclose(loss, ref, rtol=1e-3, atol=1e-2), (loss, ref)

    print("KERNEL_OK")
</pallas_src>

<mosaic_0001>
module attributes {stable_mosaic.version = 11 : i64} {
  func.func @_border_ce_kernel(%arg0: i32, %arg1: i32, %arg2: memref<1x4x16x16xf32, #tpu.memory_space<vmem>>, %arg3: memref<1x24x22xi32, #tpu.memory_space<vmem>>, %arg4: memref<1x8x16xf32, #tpu.memory_space<vmem>>) attributes {dimension_semantics = [#tpu.dimension_semantics<parallel>, #tpu.dimension_semantics<parallel>], iteration_bounds = array<i64: 2, 1>, scalar_prefetch = 0 : i64, scratch_operands = 0 : i64, tpu.core_type = #tpu.core_type<tc>, window_params = [{transform_indices = @transform_0, window_bounds = array<i64: 1, 4, 16, 16>}, {transform_indices = @transform_1, window_bounds = array<i64: 1, 24, 22>}, {transform_indices = @transform_2, window_bounds = array<i64: 1, 8, 16>}]} {
    %c0 = arith.constant 0 : index
    %c0_0 = arith.constant 0 : index
    %c0_1 = arith.constant 0 : index
    %c0_2 = arith.constant 0 : index
    %0 = vector.load %arg2[%c0, %c0_0, %c0_1, %c0_2] : memref<1x4x16x16xf32, #tpu.memory_space<vmem>>, vector<1x1x16x16xf32>
    %1 = vector.shape_cast %0 : vector<1x1x16x16xf32> to vector<16x16xf32>
    %c0_3 = arith.constant 0 : index
    %c1 = arith.constant 1 : index
    %c0_4 = arith.constant 0 : index
    %c0_5 = arith.constant 0 : index
    %2 = vector.load %arg2[%c0_3, %c1, %c0_4, %c0_5] : memref<1x4x16x16xf32, #tpu.memory_space<vmem>>, vector<1x1x16x16xf32>
    %3 = vector.shape_cast %2 : vector<1x1x16x16xf32> to vector<16x16xf32>
    %4 = arith.maximumf %1, %3 : vector<16x16xf32>
    %c0_6 = arith.constant 0 : index
    %c2 = arith.constant 2 : index
    %c0_7 = arith.constant 0 : index
    %c0_8 = arith.constant 0 : index
    %5 = vector.load %arg2[%c0_6, %c2, %c0_7, %c0_8] : memref<1x4x16x16xf32, #tpu.memory_space<vmem>>, vector<1x1x16x16xf32>
    %6 = vector.shape_cast %5 : vector<1x1x16x16xf32> to vector<16x16xf32>
    %7 = arith.maximumf %4, %6 : vector<16x16xf32>
    %c0_9 = arith.constant 0 : index
    %c3 = arith.constant 3 : index
    %c0_10 = arith.constant 0 : index
    %c0_11 = arith.constant 0 : index
    %8 = vector.load %arg2[%c0_9, %c3, %c0_10, %c0_11] : memref<1x4x16x16xf32, #tpu.memory_space<vmem>>, vector<1x1x16x16xf32>
    %9 = vector.shape_cast %8 : vector<1x1x16x16xf32> to vector<16x16xf32>
    %10 = arith.maximumf %7, %9 : vector<16x16xf32>
    %c16_i32 = arith.constant 16 : i32
    %11 = arith.muli %arg1, %c16_i32 : i32
    %12 = tpu.assume_multiple %11, 8 : i32
    %c0_12 = arith.constant 0 : index
    %13 = arith.index_cast %12 : i32 to index
    %c0_13 = arith.constant 0 : index
    %14 = vector.load %arg3[%c0_12, %13, %c0_13] : memref<1x24x22xi32, #tpu.memory_space<vmem>>, vector<1x24x22xi32>
    %15 = vector.shape_cast %14 : vector<1x24x22xi32> to vector<24x22xi32>
    %16 = vector.extract_strided_slice %15 {offsets = [3, 3], sizes = [16, 16], strides = [1, 1]} : vector<24x22xi32> to vector<16x16xi32>
    %c255_i32 = arith.constant 255 : i32
    %17 = vector.broadcast %c255_i32 : i32 to vector<24x22xi32>
    %18 = arith.andi %15, %17 : vector<24x22xi32>
    %19 = vector.extract_strided_slice %18 {offsets = [0, 0], sizes = [24, 21], strides = [1, 1]} : vector<24x22xi32> to vector<24x21xi32>
    %20 = vector.extract_strided_slice %18 {offsets = [0, 1], sizes = [24, 21], strides = [1, 1]} : vector<24x22xi32> to vector<24x21xi32>
    %21 = arith.maxsi %19, %20 : vector<24x21xi32>
    %22 = vector.extract_strided_slice %21 {offsets = [0, 0], sizes = [24, 19], strides = [1, 1]} : vector<24x21xi32> to vector<24x19xi32>
    %23 = vector.extract_strided_slice %21 {offsets = [0, 2], sizes = [24, 19], strides = [1, 1]} : vector<24x21xi32> to vector<24x19xi32>
    %24 = arith.maxsi %22, %23 : vector<24x19xi32>
    %25 = vector.extract_strided_slice %24 {offsets = [0, 0], sizes = [24, 16], strides = [1, 1]} : vector<24x19xi32> to vector<24x16xi32>
    %26 = vector.extract_strided_slice %24 {offsets = [0, 3], sizes = [24, 16], strides = [1, 1]} : vector<24x19xi32> to vector<24x16xi32>
    %27 = arith.maxsi %25, %26 : vector<24x16xi32>
    %28 = vector.extract_strided_slice %27 {offsets = [0, 0], sizes = [23, 16], strides = [1, 1]} : vector<24x16xi32> to vector<23x16xi32>
    %29 = vector.extract_strided_slice %27 {offsets = [1, 0], sizes = [23, 16], strides = [1, 1]} : vector<24x16xi32> to vector<23x16xi32>
    %30 = arith.maxsi %28, %29 : vector<23x16xi32>
    %31 = vector.extract_strided_slice %30 {offsets = [0, 0], sizes = [21, 16], strides = [1, 1]} : vector<23x16xi32> to vector<21x16xi32>
    %32 = vector.extract_strided_slice %30 {offsets = [2, 0], sizes = [21, 16], strides = [1, 1]} : vector<23x16xi32> to vector<21x16xi32>
    %33 = arith.maxsi %31, %32 : vector<21x16xi32>
    %34 = vector.extract_strided_slice %33 {offsets = [0, 0], sizes = [18, 16], strides = [1, 1]} : vector<21x16xi32> to vector<18x16xi32>
    %35 = vector.extract_strided_slice %33 {offsets = [3, 0], sizes = [18, 16], strides = [1, 1]} : vector<21x16xi32> to vector<18x16xi32>
    %36 = arith.maxsi %34, %35 : vector<18x16xi32>
    %37 = vector.extract_strided_slice %36 {offsets = [0, 0], sizes = [16, 16], strides = [1, 1]} : vector<18x16xi32> to vector<16x16xi32>
    %cst = arith.constant 0.000000e+00 : f32
    %38 = vector.broadcast %cst : f32 to vector<16x16xf32>
    %cst_14 = arith.constant 0.000000e+00 : f32
    %39 = vector.broadcast %cst_14 : f32 to vector<16x16xf32>
    %c0_15 = arith.constant 0 : index
    %c0_16 = arith.constant 0 : index
    %c0_17 = arith.constant 0 : index
    %c0_18 = arith.constant 0 : index
    %40 = vector.load %arg2[%c0_15, %c0_16, %c0_17, %c0_18] : memref<1x4x16x16xf32, #tpu.memory_space<vmem>>, vector<1x1x16x16xf32>
    %41 = vector.shape_cast %40 : vector<1x1x16x16xf32> to vector<16x16xf32>
    %42 = arith.subf %41, %10 : vector<16x16xf32>
    %43 = math.exp %42 : vector<16x16xf32>
    %44 = arith.addf %38, %43 : vector<16x16xf32>
    %c0_i32 = arith.constant 0 : i32
    %45 = vector.broadcast %c0_i32 : i32 to vector<16x16xi32>
    %46 = arith.cmpi eq, %16, %45 : vector<16x16xi32>
    %47 = arith.select %46, %41, %39 : vector<16x16xi1>, vector<16x16xf32>
    %c0_19 = arith.constant 0 : index
    %c1_20 = arith.constant 1 : index
    %c0_21 = arith.constant 0 : index
    %c0_22 = arith.constant 0 : index
    %48 = vector.load %arg2[%c0_19, %c1_20, %c0_21, %c0_22] : memref<1x4x16x16xf32, #tpu.memory_space<vmem>>, vector<1x1x16x16xf32>
    %49 = vector.shape_cast %48 : vector<1x1x16x16xf32> to vector<16x16xf32>
    %50 = arith.subf %49, %10 : vector<16x16xf32>
    %51 = math.exp %50 : vector<16x16xf32>
    %52 = arith.addf %44, %51 : vector<16x16xf32>
    %c1_i32 = arith.constant 1 : i32
    %53 = vector.broadcast %c1_i32 : i32 to vector<16x16xi32>
    %54 = arith.cmpi eq, %16, %53 : vector<16x16xi32>
    %55 = arith.select %54, %49, %47 : vector<16x16xi1>, vector<16x16xf32>
    %c0_23 = arith.constant 0 : index
    %c2_24 = arith.constant 2 : index
    %c0_25 = arith.constant 0 : index
    %c0_26 = arith.constant 0 : index
    %56 = vector.load %arg2[%c0_23, %c2_24, %c0_25, %c0_26] : memref<1x4x16x16xf32, #tpu.memory_space<vmem>>, vector<1x1x16x16xf32>
    %57 = vector.shape_cast %56 : vector<1x1x16x16xf32> to vector<16x16xf32>
    %58 = arith.subf %57, %10 : vector<16x16xf32>
    %59 = math.exp %58 : vector<16x16xf32>
    %60 = arith.addf %52, %59 : vector<16x16xf32>
    %c2_i32 = arith.constant 2 : i32
    %61 = vector.broadcast %c2_i32 : i32 to vector<16x16xi32>
    %62 = arith.cmpi eq, %16, %61 : vector<16x16xi32>
    %63 = arith.select %62, %57, %55 : vector<16x16xi1>, vector<16x16xf32>
    %c0_27 = arith.constant 0 : index
    %c3_28 = arith.constant 3 : index
    %c0_29 = arith.constant 0 : index
    %c0_30 = arith.constant 0 : index
    %64 = vector.load %arg2[%c0_27, %c3_28, %c0_29, %c0_30] : memref<1x4x16x16xf32, #tpu.memory_space<vmem>>, vector<1x1x16x16xf32>
    %65 = vector.shape_cast %64 : vector<1x1x16x16xf32> to vector<16x16xf32>
    %66 = arith.subf %65, %10 : vector<16x16xf32>
    %67 = math.exp %66 : vector<16x16xf32>
    %68 = arith.addf %60, %67 : vector<16x16xf32>
    %c3_i32 = arith.constant 3 : i32
    %69 = vector.broadcast %c3_i32 : i32 to vector<16x16xi32>
    %70 = arith.cmpi eq, %16, %69 : vector<16x16xi32>
    %71 = arith.select %70, %65, %63 : vector<16x16xi1>, vector<16x16xf32>
    %72 = math.log %68 : vector<16x16xf32>
    %73 = arith.addf %10, %72 : vector<16x16xf32>
    %74 = arith.subf %73, %71 : vector<16x16xf32>
    %75 = arith.subi %37, %16 : vector<16x16xi32>
    %76 = arith.sitofp %75 : vector<16x16xi32> to vector<16x16xf32>
    %77 = tpu.iota {dimensions = array<i32: 0>} : vector<16x16xi32>
    %78 = vector.broadcast %12 : i32 to vector<16x16xi32>
    %79 = arith.addi %78, %77 : vector<16x16xi32>
    %c-1_i32 = arith.constant -1 : i32
    %80 = vector.broadcast %c-1_i32 : i32 to vector<16x16xi32>
    %81 = arith.cmpi ne, %16, %80 : vector<16x16xi32>
    %c16_i32_31 = arith.constant 16 : i32
    %82 = vector.broadcast %c16_i32_31 : i32 to vector<16x16xi32>
    %83 = arith.cmpi slt, %79, %82 : vector<16x16xi32>
    %84 = arith.andi %81, %83 : vector<16x16xi1>
    %85 = arith.mulf %76, %74 : vector<16x16xf32>
    %cst_32 = arith.constant 0.000000e+00 : f32
    %86 = vector.broadcast %cst_32 : f32 to vector<16x16xf32>
    %87 = arith.select %84, %85, %86 : vector<16x16xi1>, vector<16x16xf32>
    %88 = vector.extract_strided_slice %87 {offsets = [0, 0], sizes = [8, 16], strides = [1, 1]} : vector<16x16xf32> to vector<8x16xf32>
    %89 = vector.extract_strided_slice %87 {offsets = [8, 0], sizes = [8, 16], strides = [1, 1]} : vector<16x16xf32> to vector<8x16xf32>
    %90 = arith.addf %88, %89 : vector<8x16xf32>
    %c0_33 = arith.constant 0 : index
    %c0_34 = arith.constant 0 : index
    %c0_35 = arith.constant 0 : index
    %91 = vector.load %arg4[%c0_33, %c0_34, %c0_35] : memref<1x8x16xf32, #tpu.memory_space<vmem>>, vector<1x8x16xf32>
    %92 = vector.shape_cast %91 : vector<1x8x16xf32> to vector<8x16xf32>
    %93 = vector.shape_cast %90 : vector<8x16xf32> to vector<1x8x16xf32>
    tpu.vector_store %arg4[%c0_33, %c0_34, %c0_35], %93 {strides = array<i32>} : memref<1x8x16xf32, #tpu.memory_space<vmem>>, vector<1x8x16xf32>,
    return
  }
  func.func @transform_0(%arg0: i32, %arg1: i32) -> (i32, i32, i32, i32) {
    %c0_i32 = arith.constant 0 : i32
    %c0_i32_0 = arith.constant 0 : i32
    %c0_i32_1 = arith.constant 0 : i32
    return %arg0, %c0_i32, %arg1, %c0_i32_0 : i32, i32, i32, i32
  }
  func.func @transform_1(%arg0: i32, %arg1: i32) -> (i32, i32, i32) {
    %c0_i32 = arith.constant 0 : i32
    %c0_i32_0 = arith.constant 0 : i32
    %c0_i32_1 = arith.constant 0 : i32
    return %arg0, %c0_i32, %c0_i32_0 : i32, i32, i32
  }
  func.func @transform_2(%arg0: i32, %arg1: i32) -> (i32, i32, i32) {
    %c0_i32 = arith.constant 0 : i32
    %c0_i32_0 = arith.constant 0 : i32
    return %arg0, %arg1, %c0_i32 : i32, i32, i32
  }
}

</mosaic_0001>

<bundles_post_ra>
// kernel: tpu_custom_call.1
= control target key start
LH: loop header
LB: loop body
LE: loop exit
PB: predicated region body
PF: predicated region fallthrough
CT: control target
= control target key end

     0   :  { %7 = vsyncpa [#allocation3], 0  ;;  %s1133_s0 = inlined_call_operand.hbm [shape: f32[2,4,16,16], index: 0, kind: input, shape index: {}]   ;;  %s1134_s1 = inlined_call_operand.vmem [shape: s32[2,24,22], index: 1, kind: input, shape index: {}]   ;;  %s1135_s2 = inlined_call_operand.hbm [shape: f32[2,8,16], index: 2, kind: output, shape index: {}]  }
   0x1   :  { %9 = vsyncpa [#allocation3 + $0x1], 0 }
   0x2   :  { %10 = vsyncpa [#allocation4], 0 }
   0x3   :  { %12 = vsyncpa [#allocation4 + $0x1], 0  ;;  %s862_s9 = smov 0   ;;  %s864_s10 = smov 0  }
   0x4   :  { %s866_s11 = smov 0   ;;  %s868_s12 = smov 0  }
   0x5   :  { %s870_s13 = smov 0   ;;  %s872_s14 = smov 0  }
   0x6 LB: > { %s614_s15 = sadd.s32 4294967295, %s838_s14   ;;  %s615_s16 = sadd.s32 4294967294, %s838_s14   ;;  %s838_s14 = sphi %s872_s14, %s18_s14   ;;  %s834_s13 = sphi %s870_s13, %s1144_s13   ;;  %s830_s12 = sphi %s868_s12, %s1143_s12   ;;  %s826_s11 = sphi %s866_s11, %s1142_s11   ;;  %s822_s10 = sphi %s864_s10, %s1141_s10   ;;  %s818_s9 = sphi %s862_s9, %s1140_s9  }
   0x7   : > { %s30_s17 = sadd.s32 1, %s834_s13  ;;  %s39_s18 = sadd.s32 1, %s826_s11 }
   0x8   : > { %p32_p0 = scmp.ge.s32.totalorder %s30_s17, 2  ;;  %p46_p1 = scmp.ne.s32.totalorder %s826_s11, %s822_s10 }
   0x9   : > { %p47_p2 = scmp.eq.s32.totalorder %s838_s14, 0  ;;  %p52_p3 = scmp.ne.s32.totalorder %s822_s10, %s818_s9 }
   0xa   : > { %s1146_s17 = smov (%p32_p0, %s30_s17), 0  ;;  %p53_p5 = scmp.eq.s32.totalorder %s614_s15, 0 }
   0xb   : > { %p903_p4 = por %p47_p2, %p46_p1  ;;  %s34_s20 = ssub.s32 %s834_s13, %s1146_s17 }
   0xc   : > { %p104_p6 = scmp.eq.s32.totalorder %s614_s15, 1  ;;  %p37_p7 = scmp.eq.s32.totalorder %s34_s20, 0 }
   0xd   : > { %p909_p8 = por %p53_p5, %p52_p3  ;;  %p110_p10 = scmp.eq.s32.totalorder %s615_s16, 1 }
   0xe   : > { %p913_p9 = por %p104_p6, %p46_p1  ;;  %p617_p12 = scmp.ge.s32.totalorder %s838_s14, 2 }
   0xf   : > { %s918_s23 = scalar_select %p37_p7, %s826_s11, %s39_s18  }
  0x10   : > { %p920_p11 = por %p110_p10, %p52_p3  ;;  %p649_p13 = scmp.lt.s32.totalorder %s838_s14, 2 }
  0x11   : > { %s130_s25 = sand.u32 1, %s826_s11   ;;  %s635_s27 = sshll.u32 %s834_s13, 6 }
  0x12   : > { %s618_s26 = sshll.u32 %s130_s25, 6  ;;  %s141_s30 = scalar_lea.hbm %s1133_s0, %s635_s27 }
  0x13   : > { %s134_s3 = scalar_lea.vmem [#allocation2], %s618_s26  ;;  %s142_s5 = sshll.u32 %s141_s30, 4  ;;  %s143_s5 = int_to_ptr.hbm [resolvable:$true] %s142_s5 }
  0x14   : > { %s144_s4 = sshll.u32 %s134_s3, 4  ;;  %p642_p0 = pnand %p649_p13, %p903_p4  ;;  %s145_s4 = int_to_ptr.vmem [resolvable:$true] %s144_s4 }
  0x15   : > { %p621_p1 = scmp.ge.s32.totalorder %s838_s14, 1  ;;  %s131_s6 = scalar_lea.sflag [#allocation3], %s130_s25 }
  0x16   : > { %s840_s7 = smov 128   ;;  %s841_s8 = smov 8  }
  0x17   : > { %644 = dma.hbm_to_vmem [thread:$0]  (!%p642_p0), %s143_s5, 1024, %s145_s4, %s131_s6, %s840_s7, %s840_s7, %s841_s8  }
  0x18   : > { %p160_p2 = scmp.lt.s32.totalorder %s838_s14, 3 }
  0x1a   : > { %p161_p3 = pnand %p621_p1, %p160_p2 }
  0x1b   : > { %s936_s15 = sand.u32 (!%p161_p3), 1, %s822_s10  }
  0x1c   : > { %164 = sbr.rel (%p161_p3) target bundleno = 654 (0x28e), region = 28  ;;  %s622_s16 = sshll.u32 (!%p161_p3), %s936_s15, 6 }
  0x1d   : > { %s167_s18 = scalar_lea.sflag (!%p161_p3), [#allocation3], %s936_s15  ;;  %s940_s20 = scalar_lea.vmem (!%p161_p3), [#allocation2], %s622_s16 }
  0x21   : > { %809 = dma.done.wait (%p909_p8), %s167_s18, 1024  }
  0x22   : > { %811 = vsyncadd (%p909_p8), %s167_s18, 4294966272  ;;  %p198_p4 = scmp.lt.s32.totalorder %s830_s12, 1  ;;  %v958_v4 = vld [vmem:[%s940_s20] sm:$0xff]  ;;  %v961_v5 = vld [vmem:[%s940_s20 + $0x8] sm:$0xff]  ;;  %s842_s21 = smov 127   ;;  %vm311_vm0 = vcmask 1042432  }
  0x23   : > { %v313_v6 = vrot.slane %v961_v5, 5  ;;  %v312_v8 = vrot.slane %v958_v4, 5  ;;  %s843_s29 = smov 3   ;;  %v973_v11 = vld [vmem:[%s940_s20 + $0x10] sm:$0xff]  ;;  %v978_v13 = vld [vmem:[%s940_s20 + $0x20] sm:$0xff]  ;;  %v988_v18 = vld [vmem:[%s940_s20 + $0x18] sm:$0xff] }
  0x24   : > { %s199_s19 = scalar_select %p198_p4, %s830_s12, 1  ;;  %v340_v12 = vrot.slane %v973_v11, 5  ;;  %v368_v14 = vrot.slane %v978_v13, 5  ;;  %v983_v15 = vld [vmem:[%s940_s20 + $0x30] sm:$0xff]  ;;  %v341_v20 = vrot.slane %v988_v18, 5  ;;  %v993_v23 = vld [vmem:[%s940_s20 + $0x28] sm:$0xff] }
  0x25   : > { %319 = vrot.lane.b32.xlu2 %v313_v6, %s843_s29  ;;  %v314_v10 = vsel %vm311_vm0, %v312_v8, %v313_v6  ;;  %v396_v16 = vrot.slane %v983_v15, 5  ;;  %s844_s30 = smov 126   ;;  %v369_v26 = vrot.slane %v993_v23, 5  ;;  %v999_v29 = vld [vmem:[%s940_s20 + $0x38] sm:$0xff]  ;;  %s845_s3 = smov 125   ;;  %vm288_vm5 = vcmask 1044480  }
  0x26   : > { %s636_s25 = smul.u32 24, %s199_s19  ;;  %v342_v22 = vsel %vm311_vm0, %v340_v12, %v341_v20  ;;  %v397_v30 = vrot.slane %v999_v29, 5  ;;  %s623_s4 = sshll.u32 %s936_s15, 3 }
  0x27   : > { %v370_v28 = vsel %vm311_vm0, %v368_v14, %v369_v26  ;;  %s196_s5 = scalar_lea.vmem [#allocation5], %s623_s4  ;;  %s632_s6 = sshll.u32 %s830_s12, 3 }
  0x28   : > { %s202_s28 = scalar_lea.vmem %s1134_s1, %s636_s25  ;;  %v398_v31 = vsel %vm311_vm0, %v396_v16, %v397_v30  ;;  %s513_s16 = scalar_lea.hbm %s1135_s2, %s632_s6 }
  0x29   : > { %v951_v0 = vld [vmem:[%s202_s28] sm:$0xff]  ;;  %v953_v1 = vld [vmem:[%s202_s28 + $0x10] sm:$0xff]  ;;  %v964_v7 = vld [vmem:[%s202_s28 + $0x8] sm:$0xff]  ;;  %s515_s18 = sshll.u32 %s196_s5, 4  ;;  %s517_s20 = sshll.u32 %s513_s16, 4  ;;  %s516_s18 = int_to_ptr.vmem [resolvable:$true] %s515_s18  ;;  %s518_s20 = int_to_ptr.hbm [resolvable:$true] %s517_s20 }
  0x2a   : > { %v225_v2 = vand.u32 255, %v951_v0  ;;  %v227_v3 = vand.u32 255, %v953_v1  ;;  %v226_v9 = vand.u32 255, %v964_v7  ;;  %v434_v35 = vrot.slane %v964_v7, 3  ;;  %s502_s19 = scalar_lea.sflag [#allocation4], %s936_s15  ;;  %s770_s25 = sshra.s32 %s518_s20, 4  ;;  %s771_s25 = int_to_ptr.hbm [resolvable:$true] %s770_s25 }
  0x2b   : > { %v436_v36 = vrot.slane %v953_v1, 3  ;;  %v433_v46 = vrot.slane %v951_v0, 3  ;;  %vm306_vm8 = vcmp.eq.s32.totalorder %v951_v0, 0  ;;  %vm335_vm9 = vcmp.eq.s32.totalorder %v951_v0, 1  ;;  %s772_s26 = scalar_lea.hbm %s771_s25, 8  ;;  %s776_s28 = scalar_lea.hbm %s1135_s2, 16 }
  0x2c   : > { %228 = vrot.lane.b32.xlu0 %v225_v2, %s842_s21  ;;  %232 = vrot.lane.b32.xlu1 %v227_v3, %s842_s21  ;;  %vm308_vm10 = vcmp.eq.s32.totalorder %v953_v1, 0  ;;  %vm363_vm11 = vcmp.eq.s32.totalorder %v951_v0, 2  ;;  %vm337_vm12 = vcmp.eq.s32.totalorder %v953_v1, 1  ;;  %vm307_vm13 = vcmp.eq.s32.totalorder %v964_v7, 0  ;;  %p773_p5 = scmp.ne.s32.totalorder %s771_s25, %s772_s26  ;;  %p777_p8 = scmp.lt.s32.totalorder %s771_s25, %s1135_s2 }
  0x2d   : > { %v437_v40 = vsel %vm288_vm5, %v434_v35, %v436_v36  ;;  %v435_v48 = vsel %vm288_vm5, %v433_v46, %v434_v35  ;;  %vm365_vm14 = vcmp.eq.s32.totalorder %v953_v1, 2  ;;  %vm336_vm15 = vcmp.eq.s32.totalorder %v964_v7, 1  ;;  %p778_p10 = scmp.lt.s32.totalorder %s776_s28, %s772_s26 }
  0x2e   : > { %p774_p6 = pnand %p773_p5, %p913_p9 }
  0x2f   : > { %p779_p13 = por %p778_p10, %p777_p8 }
  0x30   : > { %p775_p7 = pneg %p774_p6 }
  0x32   : > { %p780_p0 = pnand %p779_p13, %p775_p7 }
  0x34   : > { %230 = vrot.lane.b32.xlu0 %v226_v9, %s842_s21  ;;  %317 = vrot.lane.b32.xlu1 %v314_v10, %s843_s29 }
  0x3c   : > { %315 = vrot.lane.b32.xlu0 %v312_v8, %s843_s29 }
  0x44   : > { %343 = vrot.lane.b32.xlu0 %v340_v12, %s843_s29 }
  0x4c   : > { %371 = vrot.lane.b32.xlu0 %v368_v14, %s843_s29 }
  0x54   : > { %399 = vrot.lane.b32.xlu0 %v396_v16, %s843_s29  ;;  %v208_v16 = vmax.f32 %v958_v4, %v973_v11 }
  0x7f   : > { %v320_v32 = vpop.permute.xlu2 %319 }
  0x80   : > { %v326_v54 = vsel %vm308_vm10, %v320_v32, 0.0 }
  0x9e   : > { %v229_v17 = vpop.permute.xlu0 %228  ;;  %v233_v25 = vpop.permute.xlu1 %232 }
  0x9f   : > { %vm234_vm1 = vcmp.gt.s32.totalorder %v225_v2, %v229_v17  ;;  %vm238_vm3 = vcmp.gt.s32.totalorder %v227_v3, %v233_v25 }
  0xa0   : > { %v235_v19 = vsel %vm234_vm1, %v225_v2, %v229_v17  ;;  %v239_v27 = vsel %vm238_vm3, %v227_v3, %v233_v25  ;;  %vm393_vm1 = vcmp.eq.s32.totalorder %v953_v1, 3  ;;  %vm364_vm3 = vcmp.eq.s32.totalorder %v964_v7, 2 }
  0xa1   : > { %240 = vrot.lane.b32.xlu1 %v235_v19, %s844_s30  ;;  %v213_v17 = vmax.f32 %v208_v16, %v978_v13 }
  0xa6   : > { %v231_v21 = vpop.permute.xlu0 %230  ;;  %v318_v38 = vpop.permute.xlu1 %317 }
  0xa7   : > { %vm236_vm2 = vcmp.gt.s32.totalorder %v226_v9, %v231_v21  ;;  %v325_v59 = vsel %vm307_vm13, %v318_v38, 0.0 }
  0xa8   : > { %v237_v24 = vsel %vm236_vm2, %v226_v9, %v231_v21  ;;  %vm391_vm2 = vcmp.eq.s32.totalorder %v951_v0, 3 }
  0xa9   : > { %242 = vrot.lane.b32.xlu2 %v237_v24, %s844_s30  ;;  %345 = vrot.lane.b32.xlu1 %v342_v22, %s843_s29 }
  0xae   : > { %v316_v37 = vpop.permute.xlu0 %315 }
  0xaf   : > { %v324_v51 = vsel %vm306_vm8, %v316_v37, 0.0  ;;  %vm264_vm8 = vcmask 1046528  }
  0xb1   : > { %244 = vrot.lane.b32.xlu2 %v239_v27, %s844_s30  ;;  %373 = vrot.lane.b32.xlu1 %v370_v28, %s843_s29 }
  0xb6   : > { %v344_v42 = vpop.permute.xlu0 %343 }
  0xb7   : > { %v352_v53 = vsel %vm335_vm9, %v344_v42, %v324_v51 }
  0xb9   : > { %347 = vrot.lane.b32.xlu2 %v341_v20, %s843_s29  ;;  %401 = vrot.lane.b32.xlu1 %v398_v31, %s843_s29  ;;  %v1049_v20 = vmax.f32 %v213_v17, %v983_v15 }
  0xbb   : > { %v298_v22 = vsub.f32 %v958_v4, %v1049_v20 }
  0xbe   : > { %v372_v50 = vpop.permute.xlu0 %371 }
  0xbf   : > { %v380_v55 = vsel %vm363_vm11, %v372_v50, %v352_v53  ;;  %vm276_vm11 = vcmask 1045504  }
  0xc1   : > { %375 = vrot.lane.b32.xlu2 %v369_v26, %s843_s29  ;;  %v300_v26 = vmul.f32 1.442695, %v298_v22 }
  0xc3   : > { %706 = vpow2.f32 %v300_v26 }
  0xc6   : > { %v400_v57 = vpop.permute.xlu0 %399 }
  0xc7   : > { %v408_v63 = vsel %vm391_vm2, %v400_v57, %v380_v55 }
  0xc8   : > { %v420_v9 = vrot.slane %v408_v63, 3 }
  0xc9   : > { %403 = vrot.lane.b32.xlu2 %v397_v30, %s843_s29  ;;  %v355_v30 = vsub.f32 %v978_v13, %v1049_v20 }
  0xcb   : > { %v357_v32 = vmul.f32 1.442695, %v355_v30 }
 0x103   : > { %v243_v33 = vpop.permute.xlu2 %242 }
 0x104   : > { %vm248_vm4 = vcmp.gt.s32.totalorder %v237_v24, %v243_v33 }
 0x105   : > { %v1008_v34 = vsel %vm248_vm4, %v237_v24, %v243_v33  ;;  %vm392_vm4 = vcmp.eq.s32.totalorder %v964_v7, 3  ;;  %v327_v24 = vsub.f32 %v973_v11, %v1049_v20  ;;  %v383_v11 = vsub.f32 %v983_v15, %v1049_v20 }
 0x106   : > { %254 = vrot.lane.b32.xlu1 %v1008_v34, %s845_s3 }
 0x107   : > { %v329_v28 = vmul.f32 1.442695, %v327_v24  ;;  %v385_v37 = vmul.f32 1.442695, %v383_v11 }
 0x109   : > { %708 = vpow2.f32 %v329_v28 }
 0x10a   : > { %710 = vpow2.f32 %v357_v32 }
 0x10b   : > { %v245_v39 = vpop.permute.xlu2 %244 }
 0x10c   : > { %vm250_vm6 = vcmp.gt.s32.totalorder %v239_v27, %v245_v39 }
 0x10d   : > { %v1015_v41 = vsel %vm250_vm6, %v239_v27, %v245_v39 }
 0x10e   : > { %256 = vrot.lane.b32.xlu2 %v1015_v41, %s845_s3  ;;  %440 = vrot.lane.b32.xlu1 %v437_v40, %s845_s3 }
 0x113   : > { %v348_v43 = vpop.permute.xlu2 %347  ;;  %v241_v44 = vpop.permute.xlu1 %240 }
 0x114   : > { %vm246_vm7 = vcmp.gt.s32.totalorder %v235_v19, %v241_v44  ;;  %v354_v58 = vsel %vm337_vm12, %v348_v43, %v326_v54 }
 0x115   : > { %v1020_v45 = vsel %vm246_vm7, %v235_v19, %v241_v44  ;;  %v209_v19 = vmax.f32 %v961_v5, %v988_v18 }
 0x116   : > { %252 = vrot.lane.b32.xlu0 %v1020_v45, %s845_s3 }
 0x117   : > { %v214_v21 = vmax.f32 %v209_v19, %v993_v23 }
 0x119   : > { %v1057_v25 = vmax.f32 %v214_v21, %v999_v29 }
 0x11b   : > { %v346_v47 = vpop.permute.xlu1 %345  ;;  %v376_v49 = vpop.permute.xlu2 %375  ;;  %v299_v31 = vsub.f32 %v961_v5, %v1057_v25  ;;  %v328_v4 = vsub.f32 %v988_v18, %v1057_v25  ;;  %v356_v5 = vsub.f32 %v993_v23, %v1057_v25 }
 0x11c   : > { %v382_v60 = vsel %vm365_vm14, %v376_v49, %v354_v58  ;;  %v353_v61 = vsel %vm336_vm15, %v346_v47, %v325_v59  ;;  %v707_v18 = vpop.eup %706 }
 0x11d   : > { %v302_v36 = vmul.f32 1.442695, %v299_v31  ;;  %v331_v13 = vmul.f32 1.442695, %v328_v4  ;;  %v709_v40 = vpop.eup %708  ;;  %v359_v43 = vmul.f32 1.442695, %v356_v5 }
 0x11e   : > { %438 = vrot.lane.b32.xlu0 %v435_v48, %s845_s3  ;;  %v333_v23 = vadd.f32 %v709_v40, %v707_v18  ;;  %v711_v44 = vpop.eup %710  ;;  %v846_v40 = vmov 1  }
 0x11f   : > { %712 = vpow2.f32 %v302_v36 }
 0x120   : > { %714 = vpow2.f32 %v331_v13  ;;  %v361_v49 = vadd.f32 %v711_v44, %v333_v23 }
 0x121   : > { %716 = vpow2.f32 %v385_v37 }
 0x122   : > { %718 = vpow2.f32 %v359_v43 }
 0x123   : > { %v374_v52 = vpop.permute.xlu1 %373  ;;  %v404_v56 = vpop.permute.xlu2 %403 }
 0x124   : > { %v410_v62 = vsel %vm393_vm1, %v404_v56, %v382_v60  ;;  %v381_v2 = vsel %vm364_vm3, %v374_v52, %v353_v61 }
 0x125   : > { %v423_v8 = vrot.slane %v410_v62, 3 }
 0x12b   : > { %v402_v3 = vpop.permute.xlu1 %401 }
 0x12c   : > { %v409_v6 = vsel %vm392_vm4, %v402_v3, %v381_v2 }
 0x12d   : > { %v421_v10 = vrot.slane %v409_v6, 3 }
 0x12f   : > { %v424_v12 = vsel %vm288_vm5, %v421_v10, %v423_v8  ;;  %v422_v14 = vsel %vm288_vm5, %v420_v9, %v421_v10 }
 0x130   : > { %427 = vrot.lane.b32.xlu0 %v424_v12, %s845_s3  ;;  %425 = vrot.lane.b32.xlu2 %v422_v14, %s845_s3 }
 0x168   : > { %v257_v27 = vpop.permute.xlu2 %256 }
 0x169   : > { %vm262_vm6 = vcmp.gt.s32.totalorder %v1015_v41, %v257_v27 }
 0x16a   : > { %v263_v33 = vsel %vm262_vm6, %v1015_v41, %v257_v27  ;;  %v384_v41 = vsub.f32 %v999_v29, %v1057_v25  ;;  %vm452_vm6 = vcmp.ne.s32.totalorder %v951_v0, 4294967295 }
 0x16b   : > { %v268_v39 = vrot.slane %v263_v33, 1 }
 0x16c   : > { %v387_v46 = vmul.f32 1.442695, %v384_v41  ;;  %v459_v41 = vrot.slane %v846_v40, 5 }
 0x16d   : > { %vm274_vm10 = vcmp.gt.s32.totalorder %v263_v33, %v268_v39 }
 0x16e   : > { %v275_v51 = vsel %vm274_vm10, %v263_v33, %v268_v39  ;;  %720 = vpow2.f32 %v387_v46  ;;  %vm462_vm4 = vcmp.ne.s32.totalorder %v459_v41, 0  ;;  %vm499_vm10 = vcmask 124928  }
 0x16f   : > { %v280_v54 = vrot.slane %v275_v51, 2 }
 0x171   : > { %vm286_vm14 = vcmp.gt.s32.totalorder %v275_v51, %v280_v54 }
 0x172   : > { %v287_v9 = vsel %vm286_vm14, %v275_v51, %v280_v54 }
 0x178   : > { %v255_v35 = vpop.permute.xlu1 %254 }
 0x179   : > { %vm260_vm7 = vcmp.gt.s32.totalorder %v1008_v34, %v255_v35 }
 0x17a   : > { %v261_v38 = vsel %vm260_vm7, %v1008_v34, %v255_v35  ;;  %v713_v34 = vpop.eup %712 }
 0x17b   : > { %v266_v15 = vrot.slane %v261_v38, 1  ;;  %v715_v48 = vpop.eup %714 }
 0x17c   : > { %v717_v50 = vpop.eup %716  ;;  %v334_v29 = vadd.f32 %v715_v48, %v713_v34 }
 0x17d   : > { %v269_v42 = vsel %vm264_vm8, %v266_v15, %v268_v39  ;;  %v719_v53 = vpop.eup %718  ;;  %v389_v55 = vadd.f32 %v717_v50, %v361_v49 }
 0x17e   : > { %vm272_vm9 = vcmp.gt.s32.totalorder %v261_v38, %v269_v42  ;;  %v362_v59 = vadd.f32 %v719_v53, %v334_v29  ;;  %v721_v60 = vpop.eup %720 }
 0x17f   : > { %v273_v47 = vsel %vm272_vm9, %v261_v38, %v269_v42  ;;  %722 = vlog2.f32 %v389_v55 }
 0x180   : > { %v278_v52 = vrot.slane %v273_v47, 2  ;;  %v390_v63 = vadd.f32 %v721_v60, %v362_v59  ;;  %v441_v11 = vpop.permute.xlu1 %440 }
 0x182   : > { %v281_v57 = vsel %vm276_vm11, %v278_v52, %v280_v54  ;;  %724 = vlog2.f32 %v390_v63 }
 0x183   : > { %vm284_vm13 = vcmp.gt.s32.totalorder %v273_v47, %v281_v57 }
 0x184   : > { %v285_v3 = vsel %vm284_vm13, %v273_v47, %v281_v57 }
 0x185   : > { %v723_v8 = vpop.eup %722  ;;  %v290_v10 = vrot.slane %v285_v3, 3 }
 0x186   : > { %v412_v14 = vmul.f32 0.6931472, %v723_v8 }
 0x188   : > { %v253_v56 = vpop.permute.xlu0 %252  ;;  %v725_v24 = vpop.eup %724  ;;  %v415_v26 = vadd.f32 %v412_v14, %v1049_v20 }
 0x189   : > { %vm258_vm12 = vcmp.gt.s32.totalorder %v1020_v45, %v253_v56  ;;  %v414_v31 = vmul.f32 0.6931472, %v725_v24 }
 0x18a   : > { %v259_v58 = vsel %vm258_vm12, %v1020_v45, %v253_v56  ;;  %v292_v45 = vrot.slane %v287_v9, 3  ;;  %v426_v27 = vpop.permute.xlu2 %425 }
 0x18b   : > { %v265_v61 = vrot.slane %v259_v58, 1  ;;  %v431_v32 = vsub.f32 %v415_v26, %v426_v27  ;;  %v416_v13 = vadd.f32 %v414_v31, %v1057_v25 }
 0x18c   : > { %v293_v19 = vsel %vm288_vm5, %v290_v10, %v292_v45 }
 0x18d   : > { %v267_v62 = vsel %vm264_vm8, %v265_v61, %v266_v15  ;;  %vm296_vm3 = vcmp.gt.s32.totalorder %v285_v3, %v293_v19  ;;  %vm465_vm8 = vmand %vm452_vm6, %vm462_vm4 }
 0x18e   : > { %vm270_vm15 = vcmp.gt.s32.totalorder %v259_v58, %v267_v62  ;;  %v297_v4 = vsel %vm296_vm3, %v285_v3, %v293_v19 }
 0x18f   : > { %v271_v2 = vsel %vm270_vm15, %v259_v58, %v267_v62  ;;  %v443_v36 = vsub.s32 %v297_v4, %v441_v11 }
 0x190   : > { %v277_v6 = vrot.slane %v271_v2, 2  ;;  %v439_v21 = vpop.permute.xlu0 %438 }
 0x191   : > { %v445_v38 = vcvt.s32.f32 %v443_v36 }
 0x192   : > { %v279_v12 = vsel %vm276_vm11, %v277_v6, %v278_v52  ;;  %vm497_vm11 = vcmask 130051  }
 0x193   : > { %vm282_vm1 = vcmp.gt.s32.totalorder %v271_v2, %v279_v12 }
 0x194   : > { %v283_v16 = vsel %vm282_vm1, %v271_v2, %v279_v12 }
 0x195   : > { %v289_v17 = vrot.slane %v283_v16, 3 }
 0x197   : > { %v291_v22 = vsel %vm288_vm5, %v289_v17, %v290_v10  ;;  %vm453_vm5 = vcmp.ne.s32.totalorder %v964_v7, 4294967295 }
 0x198   : > { %vm294_vm2 = vcmp.gt.s32.totalorder %v283_v16, %v291_v22  ;;  %vm466_vm7 = vmand %vm453_vm5, %vm462_vm4 }
 0x199   : > { %v295_v28 = vsel %vm294_vm2, %v283_v16, %v291_v22 }
 0x19a   : > { %v442_v30 = vsub.s32 %v295_v28, %v439_v21 }
 0x19c   : > { %v444_v33 = vcvt.s32.f32 %v442_v30 }
 0x19e   : > { %v468_v35 = vmul.f32 %v444_v33, %v431_v32 }
 0x1a0   : > { %v472_v5 = vrot.slane %v468_v35, 5 }
 0x1a2   : > { %v428_v37 = vpop.permute.xlu0 %427  ;;  %475 = vrot.lane.b32.xlu1 %v472_v5, %s843_s29 }
 0x1a3   : > { %v432_v20 = vsub.f32 %v416_v13, %v428_v37 }
 0x1a5   : > { %v469_v18 = vmul.f32 %v445_v38, %v432_v20 }
 0x1a7   : > { %v473_v39 = vrot.slane %v469_v18, 5 }
 0x1a9   : > { %479 = vrot.lane.b32.xlu0 %v473_v39, %s843_s29  ;;  %v474_v15 = vsel %vm311_vm0, %v472_v5, %v473_v39  ;;  %vm454_vm0 = vcmp.ne.s32.totalorder %v953_v1, 4294967295 }
 0x1aa   : > { %477 = vrot.lane.b32.xlu2 %v474_v15, %s843_s29  ;;  %vm467_vm9 = vmand %vm454_vm0, %vm462_vm4 }
 0x204   : > { %v478_v25 = vpop.permute.xlu2 %477 }
 0x205   : > { %v485_v43 = vsel %vm466_vm7, %v478_v25, 0.0 }
 0x214   : > { %v476_v42 = vpop.permute.xlu1 %475 }
 0x215   : > { %v484_v23 = vsel %vm465_vm8, %v476_v42, 0.0 }
 0x216   : > { %v487_v44 = vadd.f32 %v485_v43, %v484_v23 }
 0x218   : > { %491 = vrot.lane.b32.xlu1 %v487_v44, %s845_s3 }
 0x21b   : > { %v480_v46 = vpop.permute.xlu0 %479 }
 0x21c   : > { %v486_v34 = vsel %vm467_vm9, %v480_v46, 0.0 }
 0x21d   : > { %v488_v7 = vadd.f32 %v486_v34, %v485_v43 }
 0x21f   : > { %493 = vrot.lane.b32.xlu2 %v488_v7, %s845_s3 }
 0x279   : > { %v494_v0 = vpop.permute.xlu2 %493 }
 0x27a   : > { %500 = vst.msk [vmem:[%s196_s5 + $0x5] sm:$0x7] %vm499_vm10, %v494_v0 }
 0x28a   : > { %v492_v1 = vpop.permute.xlu1 %491 }
 0x28b   : > { %498 = vst.msk [vmem:[%s196_s5 - $0x3] sm:$0xf8] %vm497_vm11, %v492_v1 }
 0x28c   : > { %783 = shalt.err (!%p780_p0)
}
 0x28d   : > { %639 = dma.vmem_to_hbm [thread:$0]  (%p913_p9), %s516_s18, 128, %s518_s20, %s502_s19  }
 0x28e PF: > { %s529_s15 = sand.u32 1, %s818_s9   ;;  %p646_p1 = pnand %p617_p12, %p920_p11 }
 0x28f   : > { %s530_s30 = scalar_lea.sflag [#allocation4], %s529_s15 }
 0x290   : > { %p647_p2 = pneg %p646_p1 }
 0x292   : > { %813 = dma.done.wait (%p647_p2), %s530_s30, 128  }
 0x293   : > { %815 = vsyncadd (%p647_p2), %s530_s30, 4294967168  ;;  %s18_s14 = sadd.s32 1, %s838_s14   ;;  %s1140_s9 = smov %s822_s10 }
 0x294   : > { %p15_p3 = scmp.ge.s32.totalorder %s18_s14, 4   ;;  %s1141_s10 = smov %s826_s11 }
 0x295   : > { %s1142_s11 = smov %s918_s23  ;;  %s1143_s12 = smov %s834_s13 }
 0x296   : > { %s1144_s13 = smov %s1146_s17  ;;  %17 = sbr.rel (!%p15_p3) target bundleno = 6 (0x6), region = 80 }
 0x29b   :  { %536 = vsyncpa [#allocation3], 1 }
 0x29c   :  { %538 = vsyncpa [#allocation3 + $0x1], 1 }
 0x29d   :  { %539 = vsyncpa [#allocation4], 1 }
 0x29e   :  { %541 = vsyncpa [#allocation4 + $0x1], 1 }

</bundles_post_ra>
